<compile_context>
chip_gen: v6e
topology: v6e:2x2x1
jax: 0.10.0
libtpu: 0.0.40
codegen_flags: <defaults>
</compile_context>

<pallas_src>
import jax
import jax.numpy as jnp
from jax.experimental import pallas as pl
from jax.experimental.pallas import tpu as pltpu

LABEL2ID = {
    "O": 0,
    "B-PERSON": 1,
    "I-PERSON": 2,
    "B-ORG": 3,
    "I-ORG": 4,
    "B-LOC": 5,
    "I-LOC": 6,
    "PAD": 7,
}

SMOOTH = 1e-5
B_WEIGHT = 3.0
I_END_WEIGHT = 2.5
CONTEXT_WEIGHT = 1.5
B_ID = LABEL2ID["B-PERSON"]
I_ID = LABEL2ID["I-PERSON"]


def _fold_to_128(x):
    """Sum lane-aligned 128-wide column groups of a (C, T) tile -> (C, 128).

    T must be 128 * 2^k; every slice below is vreg-aligned so this lowers to
    pure VPU adds (no relayout, no XLU)."""
    width = x.shape[1]
    while width > 128:
        width //= 2
        x = x[:, :width] + x[:, width:]
    return x


def _dice_partial_kernel(n_valid_ref, logits_ref, tgt_ref, inter_ref, denom_ref):
    """One token tile per grid step.

    n_valid_ref : (1,)   int32 SMEM  true (unpadded) token count
    logits_ref  : (C, T) f32/bf16    classes on sublanes, tokens on lanes
    tgt_ref     : (2, T) int32       row 0 = targets, row 1 = next targets
    inter_ref   : (C, 128) f32       per-split folded intersection accumulator
    denom_ref   : (C, 128) f32       per-split folded denominator accumulator
    """
    s = pl.program_id(0)
    i = pl.program_id(1)
    tiles_per_split = pl.num_programs(1)

    @pl.when(i == 0)
    def _init():
        inter_ref[...] = jnp.zeros_like(inter_ref)
        denom_ref[...] = jnp.zeros_like(denom_ref)

    x = logits_ref[...].astype(jnp.float32)                 # (C, T)
    c, t_sz = x.shape
    t = tgt_ref[0:1, :]                                     # (1, T) targets
    nxt = tgt_ref[1:2, :]                                   # (1, T) next targets

    # --- softmax over the class (sublane) axis ---
    m = jnp.max(x, axis=0, keepdims=True)                   # (1, T)
    e = jnp.exp(x - m)                                      # (C, T)  EUP
    z = jnp.sum(e, axis=0, keepdims=True)                   # (1, T)
    probs = e / z                                           # exact divide

    # --- one-hot targets (targets == -100 -> all-zero column, as in the ref) ---
    cls = jax.lax.broadcasted_iota(jnp.int32, (c, t_sz), 0)
    one_hot = cls == t                                      # (C, T) bool

    # --- boundary-aware weights (same override order as the PyTorch module) ---
    w = jnp.where(t == B_ID, B_WEIGHT, 1.0)
    w = jnp.where((t == I_ID) & (nxt != I_ID), I_END_WEIGHT, w)
    w = jnp.where((nxt == B_ID) & (t != -100), CONTEXT_WEIGHT, w)

    # zero weight on padded lanes -> removes them from all three sums below
    base = (s * tiles_per_split + i) * t_sz
    pos = base + jax.lax.broadcasted_iota(jnp.int32, (1, t_sz), 1)
    w = jnp.where(pos < n_valid_ref[0], w, 0.0)             # (1, T)

    # --- elementwise contributions (VPU/EUP only); one-hot*w computed once ---
    oh_w = jnp.where(one_hot, w, 0.0)                       # (C, T)
    inter_c = probs * oh_w                                  # (C, T)
    denom_c = probs * w + oh_w                              # (C, T) merged denom

    # --- fold to 128 lanes, single accumulator RMW per tile ---
    inter_ref[...] += _fold_to_128(inter_c)
    denom_ref[...] += _fold_to_128(denom_c)


def enhanced_boundary_dice_loss(logits, targets, *, n_valid=None, tile_n=32768,
                                num_splits=None, class_major=False):
    """logits: (N, C) float32/bfloat16 (or (C, N) if class_major=True),
    targets: (N,) int.  Returns a scalar float32 loss."""
    if class_major:
        c, n = logits.shape
    else:
        n, c = logits.shape

    nv = jnp.asarray(n if n_valid is None else n_valid, jnp.int32).reshape((1,))
    targets = targets.astype(jnp.int32)

    # Token tile: power-of-two multiple of 128 (required by the halving fold),
    # capped so tiny inputs don't pad out to a huge tile.
    cap = 128 * pl.next_power_of_2(max(1, pl.cdiv(n, 128)))
    tile_n = max(128, min(int(tile_n), cap))
    p = 128
    while p * 2 <= tile_n:
        p *= 2
    tile_n = p

    num_tiles = pl.cdiv(n, tile_n)
    if num_splits is None:
        num_splits = 2 if num_tiles >= 2 else 1      # uses both TCs on v7x
    tiles_per_split = pl.cdiv(num_tiles, num_splits)
    total_tiles = num_splits * tiles_per_split
    pad = total_tiles * tile_n - n

    # Next-token stream.  Forcing I-PERSON at the true sequence end reproduces
    # both PyTorch end-of-sequence rules (the i_end rule uses
    # shifted = cat([t[1:], t[-1:]]) so the last token never fires, and the
    # context rule never applies to the last token).
    nxt = jnp.concatenate([targets[1:], jnp.full((1,), I_ID, jnp.int32)])
    nxt = nxt.at[nv[0] - 1].set(I_ID)
    tgt2 = jnp.stack([targets, nxt], axis=0)                     # (2, N)
    tgt2 = jnp.pad(tgt2, ((0, 0), (0, pad)))                     # (2, N_pad)

    if class_major:
        logits_cn = jnp.pad(logits, ((0, 0), (0, pad)))          # (C, N_pad)
    else:
        # One fused transpose+pad HBM pass; emit class-major logits upstream
        # (class_major=True) to remove it entirely.
        logits_cn = jnp.pad(jnp.transpose(logits), ((0, 0), (0, pad)))

    tok_block = lambda s, i, nv_ref: (0, s * tiles_per_split + i)
    part_block = lambda s, i, nv_ref: (s, 0, 0)

    inter_part, denom_part = pl.pallas_call(
        _dice_partial_kernel,
        out_shape=(jax.ShapeDtypeStruct((num_splits, c, 128), jnp.float32),
                   jax.ShapeDtypeStruct((num_splits, c, 128), jnp.float32)),
        grid_spec=pltpu.PrefetchScalarGridSpec(
            num_scalar_prefetch=1,
            grid=(num_splits, tiles_per_split),
            in_specs=[
                pl.BlockSpec((c, tile_n), tok_block),
                pl.BlockSpec((2, tile_n), tok_block),
            ],
            out_specs=[
                pl.BlockSpec((None, c, 128), part_block),
                pl.BlockSpec((None, c, 128), part_block),
            ],
        ),
        compiler_params=pltpu.CompilerParams(
            dimension_semantics=("parallel", "arbitrary"),
            vmem_limit_bytes=32 * 1024 * 1024,
        ),
    )(nv, logits_cn, tgt2)

    # Tiny epilogue in plain JAX: combine per-split / per-lane partials.
    inter = jnp.sum(inter_part, axis=(0, 2))                      # (C,)
    denom = jnp.sum(denom_part, axis=(0, 2))                      # (C,)
    dice = (2.0 * inter + SMOOTH) / (denom + SMOOTH)
    return 1.0 - jnp.mean(dice)


def _reference_loss(logits, targets):
    """Pure-JAX reference mirroring the PyTorch 1-D path exactly."""
    probs = jax.nn.softmax(logits.astype(jnp.float32), axis=1)
    c = logits.shape[1]
    one_hot = jax.nn.one_hot(targets, c, dtype=jnp.float32)
    w = jnp.ones_like(targets, dtype=jnp.float32)
    w = jnp.where(targets == B_ID, B_WEIGHT, w)
    shifted = jnp.concatenate([targets[1:], targets[-1:]])
    w = jnp.where((targets == I_ID) & (shifted != I_ID), I_END_WEIGHT, w)
    shifted_ctx = jnp.concatenate([targets[1:], jnp.array([-1], targets.dtype)])
    w = jnp.where((shifted_ctx == B_ID) & (targets != -100), CONTEXT_WEIGHT, w)
    we = w[:, None]
    inter = (probs * one_hot * we).sum(0)
    denom = (probs * we).sum(0) + (one_hot * we).sum(0)
    dice = (2 * inter + SMOOTH) / (denom + SMOOTH)
    return 1.0 - dice.mean()


if __name__ == "__main__":
    key = jax.random.PRNGKey(0)
    k1, k2 = jax.random.split(key)
    N, C = 500, len(LABEL2ID)              # 500 tokens (non-multiple of tile), 8 classes
    logits = jax.random.normal(k1, (N, C), dtype=jnp.float32)
    targets = jax.random.randint(k2, (N,), 0, C, dtype=jnp.int32)

    # small tile to exercise the gridded / padded / 2-way-split path at toy size
    loss = jax.block_until_ready(enhanced_boundary_dice_loss(logits, targets, tile_n=128))
    ref = jax.block_until_ready(_reference_loss(logits, targets))
    assert jnp.allclose(loss, ref, rtol=1e-4, atol=1e-6), (loss, ref)

    # second config: odd tile count -> one fully padded tile in the second split
    N2 = 700
    logits2 = jax.random.normal(jax.random.PRNGKey(1), (N2, C), dtype=jnp.float32)
    targets2 = jax.random.randint(jax.random.PRNGKey(2), (N2,), 0, C, dtype=jnp.int32)
    loss2 = jax.block_until_ready(
        enhanced_boundary_dice_loss(logits2, targets2, tile_n=256))
    ref2 = jax.block_until_ready(_reference_loss(logits2, targets2))
    assert jnp.allclose(loss2, ref2, rtol=1e-4, atol=1e-6), (loss2, ref2)

    print("KERNEL_OK")
</pallas_src>

<mosaic_0001>
module attributes {stable_mosaic.version = 11 : i64} {
  func.func @_dice_partial_kernel(%arg0: i32, %arg1: i32, %arg2: memref<1xi32, #tpu.memory_space<smem>>, %arg3: memref<8x128xf32, #tpu.memory_space<vmem>>, %arg4: memref<2x128xi32, #tpu.memory_space<vmem>>, %arg5: memref<1x8x128xf32, #tpu.memory_space<vmem>>, %arg6: memref<1x8x128xf32, #tpu.memory_space<vmem>>) attributes {dimension_semantics = [#tpu.dimension_semantics<parallel>, #tpu.dimension_semantics<arbitrary>], iteration_bounds = array<i64: 2, 2>, scalar_prefetch = 1 : i64, scratch_operands = 0 : i64, tpu.core_type = #tpu.core_type<tc>, window_params = [{transform_indices = @transform_0, window_bounds = array<i64: 8, 128>}, {transform_indices = @transform_1, window_bounds = array<i64: 2, 128>}, {transform_indices = @transform_2, window_bounds = array<i64: 1, 8, 128>}, {transform_indices = @transform_3, window_bounds = array<i64: 1, 8, 128>}]} {
    %c0_i32 = arith.constant 0 : i32
    %0 = arith.cmpi eq, %arg1, %c0_i32 : i32
    %1 = arith.extui %0 : i1 to i32
    %c0_i32_0 = arith.constant 0 : i32
    %2 = arith.cmpi ne, %1, %c0_i32_0 : i32
    scf.if %2 {
      %cst_28 = arith.constant 0.000000e+00 : f32
      %68 = vector.broadcast %cst_28 : f32 to vector<8x128xf32>
      %c0_29 = arith.constant 0 : index
      %c0_30 = arith.constant 0 : index
      %c0_31 = arith.constant 0 : index
      %69 = vector.load %arg5[%c0_29, %c0_30, %c0_31] : memref<1x8x128xf32, #tpu.memory_space<vmem>>, vector<1x8x128xf32>
      %70 = vector.shape_cast %69 : vector<1x8x128xf32> to vector<8x128xf32>
      %71 = vector.shape_cast %68 : vector<8x128xf32> to vector<1x8x128xf32>
      tpu.vector_store %arg5[%c0_29, %c0_30, %c0_31], %71 {strides = array<i32>} : memref<1x8x128xf32, #tpu.memory_space<vmem>>, vector<1x8x128xf32>,
      %cst_32 = arith.constant 0.000000e+00 : f32
      %72 = vector.broadcast %cst_32 : f32 to vector<8x128xf32>
      %c0_33 = arith.constant 0 : index
      %c0_34 = arith.constant 0 : index
      %c0_35 = arith.constant 0 : index
      %73 = vector.load %arg6[%c0_33, %c0_34, %c0_35] : memref<1x8x128xf32, #tpu.memory_space<vmem>>, vector<1x8x128xf32>
      %74 = vector.shape_cast %73 : vector<1x8x128xf32> to vector<8x128xf32>
      %75 = vector.shape_cast %72 : vector<8x128xf32> to vector<1x8x128xf32>
      tpu.vector_store %arg6[%c0_33, %c0_34, %c0_35], %75 {strides = array<i32>} : memref<1x8x128xf32, #tpu.memory_space<vmem>>, vector<1x8x128xf32>,
    } else {
    }
    %c0 = arith.constant 0 : index
    %c0_1 = arith.constant 0 : index
    %3 = vector.load %arg3[%c0, %c0_1] : memref<8x128xf32, #tpu.memory_space<vmem>>, vector<8x128xf32>
    %c0_2 = arith.constant 0 : index
    %c0_3 = arith.constant 0 : index
    %4 = vector.load %arg4[%c0_2, %c0_3] : memref<2x128xi32, #tpu.memory_space<vmem>>, vector<1x128xi32>
    %c1 = arith.constant 1 : index
    %c0_4 = arith.constant 0 : index
    %5 = vector.load %arg4[%c1, %c0_4] : memref<2x128xi32, #tpu.memory_space<vmem>>, vector<1x128xi32>
    %cst = arith.constant dense<0xFF800000> : vector<128xf32>
    %6 = vector.multi_reduction <maximumf>, %3, %cst [0] : vector<8x128xf32> to vector<128xf32>
    %7 = vector.shape_cast %6 : vector<128xf32> to vector<1x128xf32>
    %8 = vector.broadcast %7 : vector<1x128xf32> to vector<8x128xf32>
    %9 = arith.subf %3, %8 : vector<8x128xf32>
    %10 = math.exp %9 : vector<8x128xf32>
    %cst_5 = arith.constant dense<0.000000e+00> : vector<128xf32>
    %11 = vector.multi_reduction <add>, %10, %cst_5 [0] : vector<8x128xf32> to vector<128xf32>
    %12 = vector.shape_cast %11 : vector<128xf32> to vector<1x128xf32>
    %13 = vector.broadcast %12 : vector<1x128xf32> to vector<8x128xf32>
    %14 = arith.divf %10, %13 : vector<8x128xf32>
    %15 = tpu.iota {dimensions = array<i32: 0>} : vector<8x128xi32>
    %16 = vector.broadcast %4 : vector<1x128xi32> to vector<8x128xi32>
    %17 = arith.cmpi eq, %15, %16 : vector<8x128xi32>
    %c1_i32 = arith.constant 1 : i32
    %18 = vector.broadcast %c1_i32 : i32 to vector<1x128xi32>
    %19 = arith.cmpi eq, %4, %18 : vector<1x128xi32>
    %cst_6 = arith.constant 3.000000e+00 : f32
    %cst_7 = arith.constant 1.000000e+00 : f32
    %20 = vector.broadcast %cst_6 : f32 to vector<1x128xf32>
    %21 = vector.broadcast %cst_7 : f32 to vector<1x128xf32>
    %22 = arith.select %19, %20, %21 : vector<1x128xi1>, vector<1x128xf32>
    %c2_i32 = arith.constant 2 : i32
    %23 = vector.broadcast %c2_i32 : i32 to vector<1x128xi32>
    %24 = arith.cmpi eq, %4, %23 : vector<1x128xi32>
    %c2_i32_8 = arith.constant 2 : i32
    %25 = vector.broadcast %c2_i32_8 : i32 to vector<1x128xi32>
    %26 = arith.cmpi ne, %5, %25 : vector<1x128xi32>
    %27 = arith.andi %24, %26 : vector<1x128xi1>
    %cst_9 = arith.constant 2.500000e+00 : f32
    %28 = vector.broadcast %cst_9 : f32 to vector<1x128xf32>
    %29 = arith.select %27, %28, %22 : vector<1x128xi1>, vector<1x128xf32>
    %c1_i32_10 = arith.constant 1 : i32
    %30 = vector.broadcast %c1_i32_10 : i32 to vector<1x128xi32>
    %31 = arith.cmpi eq, %5, %30 : vector<1x128xi32>
    %c-100_i32 = arith.constant -100 : i32
    %32 = vector.broadcast %c-100_i32 : i32 to vector<1x128xi32>
    %33 = arith.cmpi ne, %4, %32 : vector<1x128xi32>
    %34 = arith.andi %31, %33 : vector<1x128xi1>
    %cst_11 = arith.constant 1.500000e+00 : f32
    %35 = vector.broadcast %cst_11 : f32 to vector<1x128xf32>
    %36 = arith.select %34, %35, %29 : vector<1x128xi1>, vector<1x128xf32>
    %c2_i32_12 = arith.constant 2 : i32
    %37 = arith.muli %arg0, %c2_i32_12 : i32
    %38 = arith.addi %37, %arg1 : i32
    %c128_i32 = arith.constant 128 : i32
    %39 = arith.muli %38, %c128_i32 : i32
    %40 = tpu.iota {dimensions = array<i32: 1>} : vector<1x128xi32>
    %41 = vector.broadcast %39 : i32 to vector<1x128xi32>
    %42 = arith.addi %41, %40 : vector<1x128xi32>
    %c0_13 = arith.constant 0 : index
    %43 = memref.load %arg2[%c0_13] : memref<1xi32, #tpu.memory_space<smem>>
    %44 = vector.broadcast %43 : i32 to vector<1x128xi32>
    %45 = arith.cmpi slt, %42, %44 : vector<1x128xi32>
    %cst_14 = arith.constant 0.000000e+00 : f32
    %46 = vector.broadcast %cst_14 : f32 to vector<1x128xf32>
    %47 = arith.select %45, %36, %46 : vector<1x128xi1>, vector<1x128xf32>
    %cst_15 = arith.constant 0.000000e+00 : f32
    %48 = vector.shape_cast %47 : vector<1x128xf32> to vector<1x128xf32>
    %49 = vector.broadcast %48 : vector<1x128xf32> to vector<8x128xf32>
    %50 = vector.broadcast %cst_15 : f32 to vector<8x128xf32>
    %51 = arith.select %17, %49, %50 : vector<8x128xi1>, vector<8x128xf32>
    %52 = arith.mulf %14, %51 : vector<8x128xf32>
    %53 = vector.broadcast %47 : vector<1x128xf32> to vector<8x128xf32>
    %54 = arith.mulf %14, %53 : vector<8x128xf32>
    %55 = arith.addf %54, %51 : vector<8x128xf32>
    %c0_16 = arith.constant 0 : index
    %c0_17 = arith.constant 0 : index
    %c0_18 = arith.constant 0 : index
    %56 = vector.load %arg5[%c0_16, %c0_17, %c0_18] : memref<1x8x128xf32, #tpu.memory_space<vmem>>, vector<1x8x128xf32>
    %57 = vector.shape_cast %56 : vector<1x8x128xf32> to vector<8x128xf32>
    %58 = arith.addf %57, %52 : vector<8x128xf32>
    %c0_19 = arith.constant 0 : index
    %c0_20 = arith.constant 0 : index
    %c0_21 = arith.constant 0 : index
    %59 = vector.load %arg5[%c0_19, %c0_20, %c0_21] : memref<1x8x128xf32, #tpu.memory_space<vmem>>, vector<1x8x128xf32>
    %60 = vector.shape_cast %59 : vector<1x8x128xf32> to vector<8x128xf32>
    %61 = vector.shape_cast %58 : vector<8x128xf32> to vector<1x8x128xf32>
    tpu.vector_store %arg5[%c0_19, %c0_20, %c0_21], %61 {strides = array<i32>} : memref<1x8x128xf32, #tpu.memory_space<vmem>>, vector<1x8x128xf32>,
    %c0_22 = arith.constant 0 : index
    %c0_23 = arith.constant 0 : index
    %c0_24 = arith.constant 0 : index
    %62 = vector.load %arg6[%c0_22, %c0_23, %c0_24] : memref<1x8x128xf32, #tpu.memory_space<vmem>>, vector<1x8x128xf32>
    %63 = vector.shape_cast %62 : vector<1x8x128xf32> to vector<8x128xf32>
    %64 = arith.addf %63, %55 : vector<8x128xf32>
    %c0_25 = arith.constant 0 : index
    %c0_26 = arith.constant 0 : index
    %c0_27 = arith.constant 0 : index
    %65 = vector.load %arg6[%c0_25, %c0_26, %c0_27] : memref<1x8x128xf32, #tpu.memory_space<vmem>>, vector<1x8x128xf32>
    %66 = vector.shape_cast %65 : vector<1x8x128xf32> to vector<8x128xf32>
    %67 = vector.shape_cast %64 : vector<8x128xf32> to vector<1x8x128xf32>
    tpu.vector_store %arg6[%c0_25, %c0_26, %c0_27], %67 {strides = array<i32>} : memref<1x8x128xf32, #tpu.memory_space<vmem>>, vector<1x8x128xf32>,
    return
  }
  func.func @transform_0(%arg0: i32, %arg1: i32, %arg2: memref<1xi32, #tpu.memory_space<smem>>) -> (i32, i32) {
    %c2_i32 = arith.constant 2 : i32
    %0 = arith.muli %arg0, %c2_i32 : i32
    %1 = arith.addi %0, %arg1 : i32
    %c0_i32 = arith.constant 0 : i32
    %c0_i32_0 = arith.constant 0 : i32
    return %c0_i32, %1 : i32, i32
  }
  func.func @transform_1(%arg0: i32, %arg1: i32, %arg2: memref<1xi32, #tpu.memory_space<smem>>) -> (i32, i32) {
    %c2_i32 = arith.constant 2 : i32
    %0 = arith.muli %arg0, %c2_i32 : i32
    %1 = arith.addi %0, %arg1 : i32
    %c0_i32 = arith.constant 0 : i32
    %c0_i32_0 = arith.constant 0 : i32
    return %c0_i32, %1 : i32, i32
  }
  func.func @transform_2(%arg0: i32, %arg1: i32, %arg2: memref<1xi32, #tpu.memory_space<smem>>) -> (i32, i32, i32) {
    %c0_i32 = arith.constant 0 : i32
    %c0_i32_0 = arith.constant 0 : i32
    %c0_i32_1 = arith.constant 0 : i32
    return %arg0, %c0_i32, %c0_i32_0 : i32, i32, i32
  }
  func.func @transform_3(%arg0: i32, %arg1: i32, %arg2: memref<1xi32, #tpu.memory_space<smem>>) -> (i32, i32, i32) {
    %c0_i32 = arith.constant 0 : i32
    %c0_i32_0 = arith.constant 0 : i32
    %c0_i32_1 = arith.constant 0 : i32
    return %arg0, %c0_i32, %c0_i32_0 : i32, i32, i32
  }
}

</mosaic_0001>

<bundles_post_ra>
// kernel: tpu_custom_call.1
= control target key start
LH: loop header
LB: loop body
LE: loop exit
PB: predicated region body
PF: predicated region fallthrough
CT: control target
= control target key end

     0   :  { %s1169_s0 = inlined_call_operand.<no memory space> [shape: s32[1], index: 0, kind: input, shape index: {}]   ;;  %s1170_s1 = inlined_call_operand.hbm [shape: f32[8,512], index: 1, kind: input, shape index: {}]   ;;  %s1171_s2 = inlined_call_operand.hbm [shape: s32[2,512], index: 2, kind: input, shape index: {}]   ;;  %s1172_s3 = inlined_call_operand.hbm [shape: f32[2,8,128], index: 3, kind: output, shape index: {0}]   ;;  %s1173_s4 = inlined_call_operand.hbm [shape: f32[2,8,128], index: 4, kind: output, shape index: {1}]  }
   0x1   :  { %1178 = sst [smem:[#allocation21_spill]] %s1170_s1 }
   0x2   :  { %10 = sst [smem:[#allocation3]] %s1169_s0 }
   0x3   :  { %11 = vsyncpa [#allocation5], 0 }
   0x4   :  { %13 = vsyncpa [#allocation5 + $0x1], 0 }
   0x5   :  { %14 = vsyncpa [#allocation8], 0 }
   0x6   :  { %16 = vsyncpa [#allocation8 + $0x1], 0 }
   0x7   :  { %17 = vsyncpa [#allocation6], 0 }
   0x8   :  { %19 = vsyncpa [#allocation6 + $0x1], 0 }
   0x9   :  { %20 = vsyncpa [#allocation11], 0 }
   0xa   :  { %22 = vsyncpa [#allocation11 + $0x1], 0  ;;  %s896_s17 = smov 0   ;;  %s898_s18 = smov 0  }
   0xb   :  { %s900_s19 = smov 0   ;;  %s902_s20 = smov 0  }
   0xc   :  { %s904_s21 = smov 0   ;;  %s906_s22 = smov 0  }
   0xd   :  { %s908_s0 = smov 0   ;;  %s910_s23 = smov 0  }
   0xe   :  { %s912_s24 = smov 0   ;;  %s914_s25 = smov 0  }
   0xf   :  { %s916_s26 = smov 0  }
  0x10 LB: > { %1179 = sst [smem:[#allocation16_spill]] %s852_s24  ;;  %s504_s27 = sadd.s32 4294967295, %s860_s26   ;;  %s860_s26 = sphi %s916_s26, %s28_s26   ;;  %s856_s25 = sphi %s914_s25, %s1195_s25   ;;  %s852_s24 = sphi %s912_s24, %s1194_s24   ;;  %s848_s23 = sphi %s910_s23, %s1193_s23   ;;  %s844_s0 = sphi %s908_s0, %s1192_s0   ;;  %s840_s22 = sphi %s906_s22, %s1201_s22   ;;  %s836_s21 = sphi %s904_s21, %s1200_s21   ;;  %s832_s20 = sphi %s902_s20, %s1199_s20   ;;  %s828_s19 = sphi %s900_s19, %s1198_s19   ;;  %s824_s18 = sphi %s898_s18, %s1197_s18   ;;  %s820_s17 = sphi %s896_s17, %s1196_s17  }
  0x11   : > { %1180 = sst [smem:[#allocation17_spill]] %s856_s25  ;;  %s505_s28 = sadd.s32 4294967294, %s860_s26  }
  0x12   : > { %s37_s29 = sadd.s32 1, %s852_s24  ;;  %s40_s30 = sadd.s32 1, %s856_s25 }
  0x13   : > { %p38_p0 = scmp.ge.s32.totalorder %s37_s29, 2  ;;  %s506_s5 = sshll.u32 %s856_s25, 1 }
  0x14   : > { %s955_s6 = sadd.s32 %s852_s24, %s506_s5  ;;  %s51_s7 = sadd.s32 1, %s840_s22 }
  0x15   : > { %s1203_s29 = smov (%p38_p0, %s37_s29), 0  ;;  %s1205_s30 = smov (!%p38_p0, %s40_s30), %s856_s25 }
  0x16   : > { %1181 = sst [smem:[#allocation18_spill]] %s1203_s29  ;;  %p58_p1 = scmp.ne.s32.totalorder %s840_s22, %s836_s21 }
  0x17   : > { %p59_p2 = scmp.eq.s32.totalorder %s860_s26, 0  ;;  %p42_p3 = scmp.ge.s32.totalorder %s1205_s30, 2 }
  0x18   : > { %p64_p4 = scmp.ne.s32.totalorder %s836_s21, %s832_s20  ;;  %p65_p6 = scmp.eq.s32.totalorder %s504_s27, 0 }
  0x19   : > { %p965_p5 = por %p59_p2, %p58_p1  ;;  %s1207_s30 = smov (%p42_p3, %s1205_s30), 0 }
  0x1a   : > { %1183 = sst [smem:[#allocation19_spill]] %s1207_s30  ;;  %p971_p7 = por %p65_p6, %p64_p4 }
  0x1b   : > { %s107_s10 = sadd.s32 1, %s828_s19  ;;  %s507_s11 = sshll.u32 %s1207_s30, 1 }
  0x1c   : > { %s104_s12 = ssub.s32 %s856_s25, %s1207_s30  ;;  %s47_s13 = sadd.s32 %s507_s11, %s1203_s29 }
  0x1d   : > { %p105_p8 = scmp.eq.s32.totalorder %s104_s12, 0  ;;  %s48_s14 = ssub.s32 %s955_s6, %s47_s13 }
  0x1e   : > { %p117_p9 = scmp.ne.s32.totalorder %s828_s19, %s824_s18  ;;  %p49_p10 = scmp.eq.s32.totalorder %s48_s14, 0 }
  0x1f   : > { %p118_p11 = scmp.eq.s32.totalorder %s504_s27, 3  ;;  %p123_p13 = scmp.ne.s32.totalorder %s824_s18, %s820_s17 }
  0x20   : > { %s984_s15 = scalar_select %p105_p8, %s828_s19, %s107_s10  }
  0x21   : > { %s987_s16 = scalar_select %p49_p10, %s840_s22, %s51_s7  }
  0x22   : > { %p989_p12 = por %p118_p11, %p117_p9  ;;  %p124_p0 = scmp.eq.s32.totalorder %s505_s28, 3 }
  0x23   : > { %1185 = sst [smem:[#allocation20_spill]] %s987_s16  ;;  %p554_p1 = scmp.lt.s32.totalorder %s860_s26, 4 }
  0x24   : > { %s999_s5 = sand.u32 1, %s840_s22   ;;  %p1001_p2 = por %p124_p0, %p123_p13 }
  0x25   : > { %s512_s10 = sshll.u32 %s999_s5, 3  ;;  %s514_s11 = sshll.u32 %s955_s6, 7 }
  0x26   : > { %s1188_s1 = sld [smem:[#allocation21_spill]]  ;;  %s174_s14 = scalar_lea.vmem [#allocation4], %s512_s10 }
  0x27   : > { %s183_s30 = sshll.u32 %s174_s14, 4  ;;  %p1012_p3 = pnand %p554_p1, %p965_p5  ;;  %s184_s30 = int_to_ptr.vmem [resolvable:$true] %s183_s30 }
  0x28   : > { %p518_p4 = scmp.ge.s32.totalorder %s860_s26, 1  ;;  %p208_p6 = scmp.lt.s32.totalorder %s860_s26, 5 }
  0x29   : > { %s171_s29 = scalar_lea.sflag [#allocation5], %s999_s5  ;;  %p652_p8 = pneg %p1012_p3 }
  0x2a   : > { %s663_s25 = scalar_lea.vmem %s184_s30, 128  ;;  %s862_s10 = smov [#allocation4]  }
  0x2b   : > { %p664_p9 = scmp.ne.s32.totalorder %s184_s30, %s663_s25  ;;  %s668_s8 = sshll.u32 %s862_s10, 4  ;;  %s669_s8 = int_to_ptr.vmem [resolvable:$false] %s668_s8 }
  0x2c   : > { %s181_s13 = scalar_lea.hbm %s1188_s1, %s514_s11  ;;  %s670_s11 = scalar_lea.vmem %s669_s8, 256 }
  0x2d   : > { %p666_p10 = pnand %p664_p9, %p652_p8  ;;  %p671_p5 = scmp.lt.s32.totalorder %s184_s30, %s669_s8 }
  0x2e   : > { %p672_p13 = scmp.lt.s32.totalorder %s670_s11, %s663_s25 }
  0x2f   : > { %p667_p11 = pneg %p666_p10 }
  0x30   : > { %p673_p0 = por %p672_p13, %p671_p5 }
  0x32   : > { %p674_p1 = pnand %p673_p0, %p667_p11 }
  0x34   : > { %677 = shalt.err (!%p674_p1)
}
  0x35   : > { %543 = dma.hbm_to_vmem [thread:$0]  (!%p1012_p3), %s181_s13, 128, %s184_s30, %s171_s29  }
  0x36   : > { %p1030_p9 = pnand %p518_p4, %p208_p6  ;;  %s515_s12 = sshll.u32 %s999_s5, 1 }
  0x37   : > { %s517_s25 = sshll.u32 %s955_s6, 5  ;;  %s194_s11 = scalar_lea.vmem [#allocation7], %s515_s12 }
  0x38   : > { %s201_s8 = scalar_lea.hbm %s1171_s2, %s517_s25  ;;  %s203_s1 = sshll.u32 %s194_s11, 4  ;;  %s204_s1 = int_to_ptr.vmem [resolvable:$true] %s203_s1 }
  0x39   : > { %s191_s24 = scalar_lea.sflag [#allocation8], %s999_s5  ;;  %s691_s16 = scalar_lea.vmem %s204_s1, 32 }
  0x3a   : > { %p692_p10 = scmp.ne.s32.totalorder %s204_s1, %s691_s16  ;;  %s863_s29 = smov [#allocation7]  }
  0x3b   : > { %s696_s30 = sshll.u32 %s863_s29, 4  ;;  %s697_s30 = int_to_ptr.vmem [resolvable:$false] %s696_s30 }
  0x3c   : > { %p694_p11 = pnand %p692_p10, %p652_p8  ;;  %s698_s13 = scalar_lea.vmem %s697_s30, 64 }
  0x3d   : > { %p699_p4 = scmp.lt.s32.totalorder %s204_s1, %s697_s30  ;;  %p700_p6 = scmp.lt.s32.totalorder %s698_s13, %s691_s16 }
  0x3e   : > { %p695_p5 = pneg %p694_p11 }
  0x3f   : > { %p701_p13 = por %p700_p6, %p699_p4 }
  0x41   : > { %p702_p0 = pnand %p701_p13, %p695_p5 }
  0x43   : > { %705 = shalt.err (!%p702_p0)
}
  0x44   : > { %546 = dma.hbm_to_vmem [thread:$0]  (!%p1012_p3), %s201_s8, 32, %s204_s1, %s191_s24  }
  0x45   : > { %212 = sbr.rel (%p1030_p9) target bundleno = 186 (0xba), region = 28  ;;  %s214_s6 = sand.u32 (!%p1030_p9), 1, %s836_s21  }
  0x46   : > { %s519_s5 = sshll.u32 (!%p1030_p9), %s214_s6, 3  ;;  %s215_s12 = scalar_lea.sflag (!%p1030_p9), [#allocation5], %s214_s6 }
  0x47   : > { %s218_s25 = scalar_lea.vmem (!%p1030_p9), [#allocation4], %s519_s5 }
  0x4a   : > { %803 = dma.done.wait (%p971_p7), %s215_s12, 128  }
  0x4b   : > { %805 = vsyncadd (%p971_p7), %s215_s12, 4294967168  ;;  %s520_s16 = sshll.u32 %s214_s6, 1  ;;  %s224_s14 = scalar_lea.sflag [#allocation8], %s214_s6 }
  0x4c   : > { %s227_s10 = scalar_lea.vmem [#allocation7], %s520_s16 }
  0x4d   : > { %807 = dma.done.wait (%p971_p7), %s224_s14, 32  }
  0x4e   : > { %809 = vsyncadd (%p971_p7), %s224_s14, 4294967264  ;;  %s1057_s1 = sand.u32 1, %s824_s18   ;;  %p523_p3 = scmp.ne.s32.totalorder %s844_s0, 0 }
  0x4f   : > { %s521_s24 = sshll.u32 %s1057_s1, 3 }
  0x50   : > { %s1060_s28 = scalar_lea.vmem [#allocation9], %s521_s24  ;;  %s1062_s7 = scalar_lea.vmem [#allocation10], %s521_s24 }
  0x51   : > { %267 = sbr.rel (%p523_p3) target bundleno = 88 (0x58), region = 40 }
  0x56   : > { %v864_v0 = vmov 0.0  }
  0x57   : > { %268 = vst [vmem:[%s1060_s28] sm:$0xff] %v864_v0  ;;  %269 = vst [vmem:[%s1062_s7] sm:$0xff] %v864_v0 }
  0x58 PF: > { %v270_v1 = vld [vmem:[%s218_s25] sm:$0xff]  ;;  %s524_s9 = sshll.u32 %s848_s23, 1  ;;  %v271_v13 = vld [vmem:[%s227_s10] sm:$0x1]  ;;  %v272_v14 = vld [vmem:[%s227_s10 + $0x1] sm:$0x1]  ;;  %v290_v15 = vlaneseq }
  0x59   : > { %v273_v2 = vrot.slane %v270_v1, 4  ;;  %s308_s8 = sadd.s32 %s844_s0, %s524_s9  ;;  %s314_s11 = sld [smem:[#allocation3]]  ;;  %vm297_vm0 = vcmp.eq.s32.totalorder %v271_v13, 1  ;;  %vm299_vm1 = vcmp.eq.s32.totalorder %v271_v13, 2  ;;  %vm300_vm2 = vcmp.ne.s32.totalorder %v272_v14, 2 }
  0x5a   : > { %s525_s29 = sshll.u32 %s308_s8, 7  ;;  %v311_v18 = vand.u32 127, %v290_v15  ;;  %v865_v21 = vmov 1.0   ;;  %vm301_vm3 = vmand %vm299_vm1, %vm300_vm2  ;;  %vm303_vm4 = vcmp.eq.s32.totalorder %v272_v14, 1  ;;  %vm304_vm5 = vcmp.ne.s32.totalorder %v271_v13, 4294967196  ;;  %s528_s0 = sshll.u32 %s848_s23, 7 }
  0x5b   : > { %v274_v3 = vmax.f32 %v270_v1, %v273_v2  ;;  %v312_v20 = vstv %s525_s29  ;;  %v298_v22 = vsel %vm297_vm0, 3.0, %v865_v21  ;;  %v291_v24 = vshrl.u32 %v290_v15, 7  ;;  %vm305_vm6 = vmand %vm303_vm4, %vm304_vm5  ;;  %s351_s30 = sshll.u32 %s1060_s28, 4  ;;  %s364_s13 = sshll.u32 %s1062_s7, 4  ;;  %s1079_s30 = int_to_ptr.vmem [resolvable:$true] %s351_s30  ;;  %s1087_s13 = int_to_ptr.vmem [resolvable:$true] %s364_s13 }
  0x5c   : > { %v313_v25 = vadd.s32 %v312_v20, %v311_v18  ;;  %v302_v26 = vsel %vm301_vm3, 2.5, %v298_v22  ;;  %s1077_s12 = scalar_lea.hbm %s1172_s3, %s528_s0  ;;  %s1085_s16 = scalar_lea.hbm %s1173_s4, %s528_s0 }
  0x5d   : > { %v275_v4 = vrot.slane %v274_v3, 2  ;;  %v294_v28 = vsub.s32 0, %v291_v24  ;;  %v306_v29 = vsel %vm305_vm6, 1.5, %v302_v26  ;;  %s333_s14 = scalar_lea.sflag [#allocation6], %s1057_s1  ;;  %s706_s10 = scalar_lea.vmem %s1079_s30, 128 }
  0x5e   : > { %v326_v36 = vld [vmem:[%s1060_s28] sm:$0xff]  ;;  %v329_v39 = vld [vmem:[%s1062_s7] sm:$0xff]  ;;  %p707_p7 = scmp.ne.s32.totalorder %s1079_s30, %s706_s10  ;;  %s866_s24 = smov [#allocation9]  }
  0x5f   : > { %v276_v5 = vmax.f32 %v274_v3, %v275_v4  ;;  %v315_v27 = vstv %s314_s11  ;;  %v295_v30 = vrot.slane %v271_v13, %v294_v28  ;;  %s710_s9 = sshll.u32 %s866_s24, 4  ;;  %s711_s9 = int_to_ptr.vmem [resolvable:$false] %s710_s9 }
  0x60   : > { %vm316_vm7 = vcmp.lt.s32.totalorder %v313_v25, %v315_v27  ;;  %p708_p8 = pnand %p707_p7, %p989_p12  ;;  %s712_s8 = scalar_lea.vmem %s711_s9, 256 }
  0x61   : > { %v277_v6 = vrot.slane %v276_v5, 1  ;;  %v317_v31 = vsel %vm316_vm7, %v306_v29, 0.0  ;;  %vm296_vm8 = vcmp.eq.s32.totalorder %v291_v24, %v295_v30  ;;  %p713_p9 = scmp.lt.s32.totalorder %s1079_s30, %s711_s9  ;;  %p714_p10 = scmp.lt.s32.totalorder %s712_s8, %s706_s10 }
  0x62   : > { %v321_v32 = vrot.slane %v317_v31, %v294_v28  ;;  %p709_p1 = pneg %p708_p8 }
  0x63   : > { %v278_v7 = vmax.f32 %v276_v5, %v277_v6  ;;  %p715_p11 = por %p714_p10, %p713_p9 }
  0x64   : > { %v322_v34 = vsel %vm296_vm8, %v321_v32, 0.0 }
  0x65   : > { %v279_v8 = vsub.f32 %v270_v1, %v278_v7  ;;  %p716_p5 = pnand %p715_p11, %p709_p1 }
  0x67   : > { %v280_v9 = vmul.f32 1.442695, %v279_v8 }
  0x69   : > { %646 = vpow2.f32 %v280_v9 }
  0x76   : > { %v647_v10 = vpop.eup %646 }
  0x77   : > { %v282_v11 = vrot.slane %v647_v10, 4 }
  0x79   : > { %v283_v12 = vadd.f32 %v647_v10, %v282_v11 }
  0x7b   : > { %v284_v16 = vrot.slane %v283_v12, 2 }
  0x7d   : > { %v285_v17 = vadd.f32 %v284_v16, %v283_v12 }
  0x7f   : > { %v286_v19 = vrot.slane %v285_v17, 1 }
  0x81   : > { %v287_v23 = vadd.f32 %v286_v19, %v285_v17 }
  0x83   : > { %648 = vrcp.f32 %v287_v23 }
  0x90   : > { %v649_v33 = vpop.eup %648 }
  0x91   : > { %v289_v35 = vmul.f32 %v649_v33, %v647_v10 }
  0x93   : > { %v323_v37 = vmul.f32 %v322_v34, %v289_v35  ;;  %v324_v38 = vmul.f32 %v321_v32, %v289_v35 }
  0x95   : > { %v327_v40 = vadd.f32 %v326_v36, %v323_v37  ;;  %v325_v41 = vadd.f32 %v324_v38, %v322_v34 }
  0x97   : > { %328 = vst [vmem:[%s1060_s28] sm:$0xff] %v327_v40  ;;  %v330_v42 = vadd.f32 %v329_v39, %v325_v41 }
  0x98   : > { %719 = shalt.err (!%p716_p5)
}
  0x99   : > { %s720_s28 = scalar_lea.hbm %s1077_s12, 128  ;;  %s724_s0 = scalar_lea.hbm %s1172_s3, 256 }
  0x9a   : > { %p721_p4 = scmp.ne.s32.totalorder %s1077_s12, %s720_s28  ;;  %p725_p0 = scmp.lt.s32.totalorder %s1077_s12, %s1172_s3 }
  0x9b   : > { %p726_p3 = scmp.lt.s32.totalorder %s724_s0, %s720_s28 }
  0x9c   : > { %p722_p6 = pnand %p721_p4, %p989_p12 }
  0x9d   : > { %p727_p7 = por %p726_p3, %p725_p0 }
  0x9e   : > { %p723_p13 = pneg %p722_p6 }
  0xa0   : > { %p728_p8 = pnand %p727_p7, %p723_p13 }
  0xa2   : > { %731 = shalt.err (!%p728_p8)
}
  0xa3   : > { %536 = dma.vmem_to_hbm [thread:$0]  (%p989_p12), %s1079_s30, 128, %s1077_s12, %s333_s14   ;;  %331 = vst [vmem:[%s1062_s7] sm:$0xff] %v330_v42 }
  0xa4   : > { %s338_s23 = scalar_lea.sflag [#allocation11], %s1057_s1  ;;  %s732_s25 = scalar_lea.vmem %s1087_s13, 128 }
  0xa5   : > { %p733_p1 = scmp.ne.s32.totalorder %s1087_s13, %s732_s25  ;;  %s867_s10 = smov [#allocation10]  }
  0xa6   : > { %s736_s24 = sshll.u32 %s867_s10, 4  ;;  %s737_s24 = int_to_ptr.vmem [resolvable:$false] %s736_s24 }
  0xa7   : > { %p734_p9 = pnand %p733_p1, %p989_p12  ;;  %s738_s9 = scalar_lea.vmem %s737_s24, 256 }
  0xa8   : > { %p739_p11 = scmp.lt.s32.totalorder %s1087_s13, %s737_s24  ;;  %p740_p5 = scmp.lt.s32.totalorder %s738_s9, %s732_s25 }
  0xa9   : > { %p735_p10 = pneg %p734_p9 }
  0xaa   : > { %p741_p4 = por %p740_p5, %p739_p11 }
  0xac   : > { %p742_p6 = pnand %p741_p4, %p735_p10 }
  0xae   : > { %745 = shalt.err (!%p742_p6)
}
  0xaf   : > { %s746_s7 = scalar_lea.hbm %s1085_s16, 128  ;;  %s750_s12 = scalar_lea.hbm %s1173_s4, 256 }
  0xb0   : > { %p747_p13 = scmp.ne.s32.totalorder %s1085_s16, %s746_s7  ;;  %p751_p7 = scmp.lt.s32.totalorder %s1085_s16, %s1173_s4 }
  0xb1   : > { %p752_p8 = scmp.lt.s32.totalorder %s750_s12, %s746_s7 }
  0xb2   : > { %p748_p0 = pnand %p747_p13, %p989_p12 }
  0xb3   : > { %p753_p1 = por %p752_p8, %p751_p7 }
  0xb4   : > { %p749_p3 = pneg %p748_p0 }
  0xb6   : > { %p754_p9 = pnand %p753_p1, %p749_p3 }
  0xb8   : > { %757 = shalt.err (!%p754_p9)
}
  0xb9   : > { %537 = dma.vmem_to_hbm [thread:$0]  (%p989_p12), %s1087_s13, 128, %s1085_s16, %s338_s23  }
  0xba PF: > { %p555_p10 = scmp.ge.s32.totalorder %s860_s26, 2  ;;  %s376_s28 = sand.u32 1, %s820_s17  }
  0xbb   : > { %s377_s11 = scalar_lea.sflag [#allocation6], %s376_s28 }
  0xbc   : > { %p548_p11 = pnand %p555_p10, %p1001_p2 }
  0xbe   : > { %p549_p5 = pneg %p548_p11 }
  0xc0   : > { %811 = dma.done.wait (%p549_p5), %s377_s11, 128  }
  0xc1   : > { %813 = vsyncadd (%p549_p5), %s377_s11, 4294967168  ;;  %s386_s29 = scalar_lea.sflag [#allocation11], %s376_s28 }
  0xc2   : > { %815 = dma.done.wait (%p549_p5), %s386_s29, 128  }
  0xc3   : > { %817 = vsyncadd (%p549_p5), %s386_s29, 4294967168  ;;  %s28_s26 = sadd.s32 1, %s860_s26   ;;  %s1191_s13 = sld [smem:[#allocation20_spill]] }
  0xc4   : > { %p25_p4 = scmp.ge.s32.totalorder %s28_s26, 6   ;;  %s1192_s0 = sld [smem:[#allocation16_spill]] }
  0xc5   : > { %s1193_s23 = sld [smem:[#allocation17_spill]]  ;;  %s1196_s17 = smov %s824_s18 }
  0xc6   : > { %s1194_s24 = sld [smem:[#allocation18_spill]]  ;;  %s1197_s18 = smov %s828_s19 }
  0xc7   : > { %s1195_s25 = sld [smem:[#allocation19_spill]]  ;;  %s1198_s19 = smov %s984_s15 }
  0xc8   : > { %s1199_s20 = smov %s836_s21  ;;  %s1200_s21 = smov %s840_s22 }
  0xc9   : > { %s1201_s22 = smov %s1191_s13  ;;  %27 = sbr.rel (!%p25_p4) target bundleno = 16 (0x10), region = 107 }
  0xce   :  { %391 = vsyncpa [#allocation5], 1 }
  0xcf   :  { %393 = vsyncpa [#allocation5 + $0x1], 1 }
  0xd0   :  { %394 = vsyncpa [#allocation8], 1 }
  0xd1   :  { %396 = vsyncpa [#allocation8 + $0x1], 1 }
  0xd2   :  { %397 = vsyncpa [#allocation6], 1 }
  0xd3   :  { %399 = vsyncpa [#allocation6 + $0x1], 1 }
  0xd4   :  { %400 = vsyncpa [#allocation11], 1 }
  0xd5   :  { %402 = vsyncpa [#allocation11 + $0x1], 1 }

</bundles_post_ra>
